<compile_context>
chip_gen: v7x
topology: tpu7x:2x2x1
jax: 0.10.0
libtpu: 0.0.40
codegen_flags: <defaults>
</compile_context>

<pallas_src>
import functools

import jax
import jax.numpy as jnp
from jax.experimental import pallas as pl
from jax.experimental.pallas import tpu as pltpu


def _focal_ls_kernel(x_ref, t_ref, loss_ref, *, gamma, smoothing, classes,
                     total_rows, block_rows):
    x = x_ref[...].astype(jnp.float32)        # (tm, C)
    t = t_ref[...]                            # (tm, 1) int32

    # Numerically stable log-softmax / softmax over the class (last) axis.
    m = jnp.max(x, axis=-1, keepdims=True)
    z = x - m
    e = jnp.exp(z)
    s = jnp.sum(e, axis=-1, keepdims=True)
    logp = z - jnp.log(s)                     # (tm, C)
    p = e / s                                 # (tm, C)

    one_minus_p = jnp.maximum(1.0 - p, 0.0)
    if gamma == 2.0:                          # common case: stays on the VPU
        fw = one_minus_p * one_minus_p
    elif gamma == 1.0:
        fw = one_minus_p
    else:
        fw = jnp.power(one_minus_p, jnp.float32(gamma))
    focal = fw * logp                         # (tm, C)

    base = smoothing / (classes - 1)
    conf = 1.0 - smoothing

    # Gather the target column via a one-hot select (no dynamic gather on TPU).
    col = jax.lax.broadcasted_iota(jnp.int32, focal.shape, 1)
    focal_t = jnp.sum(jnp.where(col == t, focal, 0.0), axis=-1, keepdims=True)
    focal_sum = jnp.sum(focal, axis=-1, keepdims=True)

    # sum_c true_dist_c * focal_c = base*sum_c focal_c + (conf-base)*focal_t
    row_loss = -(base * focal_sum + (conf - base) * focal_t)   # (tm, 1)

    # Tail masking: rows past the true row count contribute nothing.
    row0 = pl.program_id(0) * block_rows
    row = jax.lax.broadcasted_iota(jnp.int32, row_loss.shape, 0) + row0
    loss_ref[...] = jnp.where(row < total_rows, row_loss, 0.0)


def focal_label_smoothing_loss(pred, target, *, gamma=2.0, smoothing=0.2,
                               classes=None, tm=1024):
    """Equivalent of FocalLabelSmoothingLoss(gamma, classes, smoothing)(pred, target).

    pred:   (M, C) float logits, class dim last
    target: (M,)   integer class indices
    """
    M, C = pred.shape
    if classes is None:
        classes = C
    t2d = target.reshape(M, 1).astype(jnp.int32)

    tm = max(8, (int(tm) // 8) * 8)           # keep block sublane-aligned
    tm_eff = M if M <= tm else tm             # single full block for small M
    grid = (pl.cdiv(M, tm_eff),)

    row_losses = pl.pallas_call(
        functools.partial(
            _focal_ls_kernel, gamma=float(gamma), smoothing=float(smoothing),
            classes=int(classes), total_rows=int(M), block_rows=int(tm_eff)),
        out_shape=jax.ShapeDtypeStruct((M, 1), jnp.float32),
        grid_spec=pltpu.PrefetchScalarGridSpec(
            num_scalar_prefetch=0,
            grid=grid,
            in_specs=[
                pl.BlockSpec((tm_eff, C), lambda i: (i, 0)),
                pl.BlockSpec((tm_eff, 1), lambda i: (i, 0)),
            ],
            out_specs=pl.BlockSpec((tm_eff, 1), lambda i: (i, 0)),
        ),
        compiler_params=pltpu.CompilerParams(
            dimension_semantics=("parallel",)),
    )(pred, t2d)

    # Final mean over all rows (one XLA tree reduce — accurate and cheap).
    return jnp.sum(row_losses) / M


def _reference(pred, target, *, gamma=2.0, smoothing=0.2, classes=None):
    """Plain-JAX reference matching the PyTorch forward exactly."""
    x = pred.astype(jnp.float32)
    if classes is None:
        classes = x.shape[-1]
    logp = jax.nn.log_softmax(x, axis=-1)
    p = jnp.exp(logp)
    focal = jnp.power(1.0 - p, gamma) * logp
    base = smoothing / (classes - 1)
    conf = 1.0 - smoothing
    true_dist = jnp.full_like(x, base)
    true_dist = true_dist.at[jnp.arange(x.shape[0]), target].set(conf)
    return jnp.mean(jnp.sum(-true_dist * focal, axis=-1))


if __name__ == "__main__":
    key = jax.random.PRNGKey(0)
    k1, k2, k3, k4 = jax.random.split(key, 4)

    # Segmentation-style usage: per-pixel logits flattened to (N*H*W, classes).
    N, H, W, CLASSES = 2, 16, 16, 18
    M = N * H * W
    pred = jax.random.normal(k1, (M, CLASSES), dtype=jnp.float32)
    target = jax.random.randint(k2, (M,), 0, CLASSES, dtype=jnp.int32)

    loss = focal_label_smoothing_loss(pred, target, tm=128)  # multi-block path
    jax.block_until_ready(loss)
    ref = _reference(pred, target)
    assert jnp.allclose(loss, ref, rtol=1e-5, atol=1e-5), (loss, ref)

    # Ragged row count exercises the cdiv grid + tail masking.
    M2 = 500
    pred2 = jax.random.normal(k3, (M2, CLASSES), dtype=jnp.float32)
    target2 = jax.random.randint(k4, (M2,), 0, CLASSES, dtype=jnp.int32)
    loss2 = focal_label_smoothing_loss(pred2, target2, tm=128)
    jax.block_until_ready(loss2)
    ref2 = _reference(pred2, target2)
    assert jnp.allclose(loss2, ref2, rtol=1e-5, atol=1e-5), (loss2, ref2)

    print("KERNEL_OK")
</pallas_src>

<mosaic_0001>
module attributes {stable_mosaic.version = 11 : i64} {
  func.func @_focal_ls_kernel(%arg0: i32, %arg1: memref<128x18xf32, #tpu.memory_space<vmem>>, %arg2: memref<128x1xi32, #tpu.memory_space<vmem>>, %arg3: memref<128x1xf32, #tpu.memory_space<vmem>>) attributes {dimension_semantics = [#tpu.dimension_semantics<parallel>], iteration_bounds = array<i64: 4>, scalar_prefetch = 0 : i64, scratch_operands = 0 : i64, tpu.core_type = #tpu.core_type<tc>, window_params = [{transform_indices = @transform_0, window_bounds = array<i64: 128, 18>}, {transform_indices = @transform_1, window_bounds = array<i64: 128, 1>}, {transform_indices = @transform_2, window_bounds = array<i64: 128, 1>}]} {
    %c0 = arith.constant 0 : index
    %c0_0 = arith.constant 0 : index
    %0 = vector.load %arg1[%c0, %c0_0] : memref<128x18xf32, #tpu.memory_space<vmem>>, vector<128x18xf32>
    %c0_1 = arith.constant 0 : index
    %c0_2 = arith.constant 0 : index
    %1 = vector.load %arg2[%c0_1, %c0_2] : memref<128x1xi32, #tpu.memory_space<vmem>>, vector<128x1xi32>
    %cst = arith.constant dense<0xFF800000> : vector<128xf32>
    %2 = vector.multi_reduction <maximumf>, %0, %cst [1] : vector<128x18xf32> to vector<128xf32>
    %3 = vector.shape_cast %2 : vector<128xf32> to vector<128x1xf32>
    %4 = vector.broadcast %3 : vector<128x1xf32> to vector<128x18xf32>
    %5 = arith.subf %0, %4 : vector<128x18xf32>
    %6 = math.exp %5 : vector<128x18xf32>
    %cst_3 = arith.constant dense<0.000000e+00> : vector<128xf32>
    %7 = vector.multi_reduction <add>, %6, %cst_3 [1] : vector<128x18xf32> to vector<128xf32>
    %8 = vector.shape_cast %7 : vector<128xf32> to vector<128x1xf32>
    %9 = math.log %8 : vector<128x1xf32>
    %10 = vector.broadcast %9 : vector<128x1xf32> to vector<128x18xf32>
    %11 = arith.subf %5, %10 : vector<128x18xf32>
    %12 = vector.broadcast %8 : vector<128x1xf32> to vector<128x18xf32>
    %13 = arith.divf %6, %12 : vector<128x18xf32>
    %cst_4 = arith.constant 1.000000e+00 : f32
    %14 = vector.broadcast %cst_4 : f32 to vector<128x18xf32>
    %15 = arith.subf %14, %13 : vector<128x18xf32>
    %cst_5 = arith.constant 0.000000e+00 : f32
    %16 = vector.broadcast %cst_5 : f32 to vector<128x18xf32>
    %17 = arith.maximumf %15, %16 : vector<128x18xf32>
    %18 = arith.mulf %17, %17 : vector<128x18xf32>
    %19 = arith.mulf %18, %11 : vector<128x18xf32>
    %20 = tpu.iota {dimensions = array<i32: 1>} : vector<128x18xi32>
    %21 = vector.broadcast %1 : vector<128x1xi32> to vector<128x18xi32>
    %22 = arith.cmpi eq, %20, %21 : vector<128x18xi32>
    %cst_6 = arith.constant 0.000000e+00 : f32
    %23 = vector.broadcast %cst_6 : f32 to vector<128x18xf32>
    %24 = arith.select %22, %19, %23 : vector<128x18xi1>, vector<128x18xf32>
    %cst_7 = arith.constant dense<0.000000e+00> : vector<128xf32>
    %25 = vector.multi_reduction <add>, %24, %cst_7 [1] : vector<128x18xf32> to vector<128xf32>
    %26 = vector.shape_cast %25 : vector<128xf32> to vector<128x1xf32>
    %cst_8 = arith.constant dense<0.000000e+00> : vector<128xf32>
    %27 = vector.multi_reduction <add>, %19, %cst_8 [1] : vector<128x18xf32> to vector<128xf32>
    %28 = vector.shape_cast %27 : vector<128xf32> to vector<128x1xf32>
    %cst_9 = arith.constant 0.0117647061 : f32
    %29 = vector.broadcast %cst_9 : f32 to vector<128x1xf32>
    %30 = arith.mulf %29, %28 : vector<128x1xf32>
    %cst_10 = arith.constant 0.788235306 : f32
    %31 = vector.broadcast %cst_10 : f32 to vector<128x1xf32>
    %32 = arith.mulf %31, %26 : vector<128x1xf32>
    %33 = arith.addf %30, %32 : vector<128x1xf32>
    %cst_11 = arith.constant 0.000000e+00 : f32
    %34 = vector.broadcast %cst_11 : f32 to vector<128x1xf32>
    %35 = arith.subf %34, %33 : vector<128x1xf32>
    %c128_i32 = arith.constant 128 : i32
    %36 = arith.muli %arg0, %c128_i32 : i32
    %37 = tpu.iota {dimensions = array<i32: 0>} : vector<128x1xi32>
    %38 = vector.broadcast %36 : i32 to vector<128x1xi32>
    %39 = arith.addi %37, %38 : vector<128x1xi32>
    %c512_i32 = arith.constant 512 : i32
    %40 = vector.broadcast %c512_i32 : i32 to vector<128x1xi32>
    %41 = arith.cmpi slt, %39, %40 : vector<128x1xi32>
    %cst_12 = arith.constant 0.000000e+00 : f32
    %42 = vector.broadcast %cst_12 : f32 to vector<128x1xf32>
    %43 = arith.select %41, %35, %42 : vector<128x1xi1>, vector<128x1xf32>
    %c0_13 = arith.constant 0 : index
    %c0_14 = arith.constant 0 : index
    %44 = vector.load %arg3[%c0_13, %c0_14] : memref<128x1xf32, #tpu.memory_space<vmem>>, vector<128x1xf32>
    tpu.vector_store %arg3[%c0_13, %c0_14], %43 {strides = array<i32>} : memref<128x1xf32, #tpu.memory_space<vmem>>, vector<128x1xf32>,
    return
  }
  func.func @transform_0(%arg0: i32) -> (i32, i32) {
    %c0_i32 = arith.constant 0 : i32
    %c0_i32_0 = arith.constant 0 : i32
    return %arg0, %c0_i32 : i32, i32
  }
  func.func @transform_1(%arg0: i32) -> (i32, i32) {
    %c0_i32 = arith.constant 0 : i32
    %c0_i32_0 = arith.constant 0 : i32
    return %arg0, %c0_i32 : i32, i32
  }
  func.func @transform_2(%arg0: i32) -> (i32, i32) {
    %c0_i32 = arith.constant 0 : i32
    %c0_i32_0 = arith.constant 0 : i32
    return %arg0, %c0_i32 : i32, i32
  }
}

</mosaic_0001>

<bundles_post_ra>
// kernel: tpu_custom_call.1
= control target key start
LH: loop header
LB: loop body
LE: loop exit
PB: predicated region body
PF: predicated region fallthrough
CT: control target
= control target key end

     0   :  { %s1029_s9 = smov 0   ;;  %s1570_s0 = inlined_call_operand.vmem [shape: f32[512,18], index: 0, kind: input, shape index: {}]   ;;  %s1571_s1 = inlined_call_operand.vmem [shape: s32[512,1], index: 1, kind: input, shape index: {}]   ;;  %s1572_s2 = inlined_call_operand.vmem [shape: f32[512,1], index: 2, kind: output, shape index: {}]  }
   0x1 LB: > { %s884_s10 = sadd.s32 4294967295, %s1011_s9   ;;  %p888_p0 = scmp.ge.s32.totalorder %s1011_s9, 1  ;;  %s1011_s9 = sphi %s1029_s9, %s12_s9  }
   0x2   : > { %p124_p1 = scmp.lt.s32.totalorder %s1011_s9, 5 }
   0x4   : > { %p125_p2 = pnand %p888_p0, %p124_p1 }
   0x6   : > { %128 = sbr.rel (%p125_p2) target bundleno = 560 (0x230), region = 28 }
   0xd   : > { %s889_s11 = sshll.u32 %s884_s10, 4  ;;  %v1013_v0 = vmov 0   ;;  %vm201_vm0 = vcmask 146432   ;;  %s895_s19 = sshll.u32 %s884_s10, 7 }
   0xe   : > { %p152_p3 = scmp.lt.s32.totalorder %s889_s11, 63  ;;  %908 = vset.pattern.permute.xlu1 %v1013_v0  ;;  %907 = vset.pattern.permute.xlu0 %v1013_v0 }
  0x10   : > { %s1579_s11 = smov (!%p152_p3, %s889_s11), 63 }
  0x11   : > { %s1039_s12 = sshll.u32 %s1579_s11, 3 }
  0x12   : > { %s1045_s15 = scalar_lea.vmem %s1570_s0, %s1039_s12  ;;  %s1131_s18 = scalar_lea.vmem %s1571_s1, %s1039_s12 }
  0x13   : > { %v1048_v1 = vld [vmem:[%s1045_s15] sm:$0xff]  ;;  %v1051_v2 = vld [vmem:[%s1045_s15 + $0x10] sm:$0xff]  ;;  %v1054_v3 = vld [vmem:[%s1045_s15 + $0x8] sm:$0xff]  ;;  %s1495_s22 = scalar_lea.vmem %s1572_s2, %s1039_s12 }
  0x14   : > { %v202_v4 = vsel %vm201_vm0, %v1048_v1, -inf  ;;  %v208_v5 = vsel %vm201_vm0, %v1051_v2, -inf  ;;  %v1061_v6 = vld [vmem:[%s1045_s15 + $0x18] sm:$0xff]  ;;  %v205_v7 = vsel %vm201_vm0, %v1054_v3, -inf  ;;  %v1068_v9 = vld [vmem:[%s1045_s15 + $0x20] sm:$0xff]  ;;  %v1071_v10 = vld [vmem:[%s1045_s15 + $0x28] sm:$0xff] }
  0x15   : > { %203 = vmax.xlane.f32.xlu0 %v202_v4  ;;  %209 = vmax.xlane.f32.xlu1 %v208_v5  ;;  %v211_v8 = vsel %vm201_vm0, %v1061_v6, -inf  ;;  %v214_v11 = vsel %vm201_vm0, %v1068_v9, -inf  ;;  %v217_v12 = vsel %vm201_vm0, %v1071_v10, -inf  ;;  %v1078_v13 = vld [vmem:[%s1045_s15 + $0x30] sm:$0xff]  ;;  %v1081_v14 = vld [vmem:[%s1045_s15 + $0x38] sm:$0xff]  ;;  %v1088_v17 = vld [vmem:[%s1045_s15 + $0x40] sm:$0xff] }
  0x16   : > { %v220_v15 = vsel %vm201_vm0, %v1078_v13, -inf  ;;  %v223_v16 = vsel %vm201_vm0, %v1081_v14, -inf  ;;  %v1091_v18 = vld [vmem:[%s1045_s15 + $0x48] sm:$0xff]  ;;  %v226_v19 = vsel %vm201_vm0, %v1088_v17, -inf  ;;  %v1098_v21 = vld [vmem:[%s1045_s15 + $0x50] sm:$0xff]  ;;  %v1101_v22 = vld [vmem:[%s1045_s15 + $0x58] sm:$0xff] }
  0x17   : > { %v229_v20 = vsel %vm201_vm0, %v1091_v18, -inf  ;;  %v232_v23 = vsel %vm201_vm0, %v1098_v21, -inf  ;;  %v235_v24 = vsel %vm201_vm0, %v1101_v22, -inf  ;;  %v1108_v25 = vld [vmem:[%s1045_s15 + $0x60] sm:$0xff]  ;;  %v1111_v26 = vld [vmem:[%s1045_s15 + $0x68] sm:$0xff]  ;;  %v1118_v29 = vld [vmem:[%s1045_s15 + $0x70] sm:$0xff] }
  0x18   : > { %v238_v27 = vsel %vm201_vm0, %v1108_v25, -inf  ;;  %v241_v28 = vsel %vm201_vm0, %v1111_v26, -inf  ;;  %v1121_v30 = vld [vmem:[%s1045_s15 + $0x78] sm:$0xff]  ;;  %v244_v31 = vsel %vm201_vm0, %v1118_v29, -inf  ;;  %v186_v33 = vld [vmem:[%s1131_s18 + $0x8] sm:$0xff]  ;;  %v187_v34 = vld [vmem:[%s1131_s18 + $0x10] sm:$0xff] }
  0x19   : > { %206 = vmax.xlane.f32.xlu0 %v205_v7  ;;  %212 = vmax.xlane.f32.xlu1 %v211_v8  ;;  %v247_v32 = vsel %vm201_vm0, %v1121_v30, -inf  ;;  %v185_v35 = vld [vmem:[%s1131_s18] sm:$0xff]  ;;  %v188_v36 = vld [vmem:[%s1131_s18 + $0x18] sm:$0xff]  ;;  %v194_v37 = vld [vmem:[%s1131_s18 + $0x48] sm:$0xff] }
  0x1a   : > { %v189_v38 = vld [vmem:[%s1131_s18 + $0x20] sm:$0xff]  ;;  %v196_v39 = vld [vmem:[%s1131_s18 + $0x58] sm:$0xff]  ;;  %v190_v40 = vld [vmem:[%s1131_s18 + $0x28] sm:$0xff] }
  0x1b   : > { %v198_v41 = vld [vmem:[%s1131_s18 + $0x68] sm:$0xff]  ;;  %v191_v42 = vld [vmem:[%s1131_s18 + $0x30] sm:$0xff]  ;;  %v192_v43 = vld [vmem:[%s1131_s18 + $0x38] sm:$0xff] }
  0x1c   : > { %v193_v44 = vld [vmem:[%s1131_s18 + $0x40] sm:$0xff]  ;;  %v195_v45 = vld [vmem:[%s1131_s18 + $0x50] sm:$0xff] }
  0x1d   : > { %215 = vmax.xlane.f32.xlu0 %v214_v11  ;;  %218 = vmax.xlane.f32.xlu1 %v217_v12  ;;  %v197_v46 = vld [vmem:[%s1131_s18 + $0x60] sm:$0xff] }
  0x21   : > { %221 = vmax.xlane.f32.xlu0 %v220_v15  ;;  %224 = vmax.xlane.f32.xlu1 %v223_v16 }
  0x25   : > { %227 = vmax.xlane.f32.xlu0 %v226_v19  ;;  %230 = vmax.xlane.f32.xlu1 %v229_v20 }
  0x29   : > { %233 = vmax.xlane.f32.xlu0 %v232_v23  ;;  %236 = vmax.xlane.f32.xlu1 %v235_v24 }
  0x2d   : > { %239 = vmax.xlane.f32.xlu0 %v238_v27  ;;  %242 = vmax.xlane.f32.xlu1 %v241_v28 }
  0x31   : > { %245 = vmax.xlane.f32.xlu0 %v244_v31  ;;  %248 = vmax.xlane.f32.xlu1 %v247_v32 }
  0x42   : > { %496 = vperm.xlu1 %908, %v186_v33  }
  0x46   : > { %499 = vperm.xlu1 %908, %v187_v34  }
  0x47   : > { %493 = vperm.xlu0 %907, %v185_v35  }
  0x4a   : > { %502 = vperm.xlu1 %908, %v188_v36  }
  0x4b   : > { %520 = vperm.xlu0 %907, %v194_v37  }
  0x4e   : > { %505 = vperm.xlu1 %908, %v189_v38  }
  0x4f   : > { %526 = vperm.xlu0 %907, %v196_v39  }
  0x52   : > { %508 = vperm.xlu1 %908, %v190_v40  }
  0x53   : > { %532 = vperm.xlu0 %907, %v198_v41  }
  0x56   : > { %511 = vperm.xlu1 %908, %v191_v42  }
  0x5a   : > { %514 = vperm.xlu1 %908, %v192_v43  }
  0x5e   : > { %517 = vperm.xlu1 %908, %v193_v44  }
  0x62   : > { %523 = vperm.xlu1 %908, %v195_v45  }
  0x66   : > { %529 = vperm.xlu1 %908, %v197_v46  }
  0xa2   : > { %v204_v47 = vpop.xlane.xlu0 %203  ;;  %v210_v48 = vpop.xlane.xlu1 %209 }
  0xa3   : > { %v1148_v49 = vsub.f32 %v1048_v1, %v204_v47  ;;  %v1151_v50 = vsub.f32 %v1051_v2, %v210_v48 }
  0xa5   : > { %v266_v51 = vmul.f32 1.442695, %v1148_v49  ;;  %v270_v52 = vmul.f32 1.442695, %v1151_v50 }
  0xa6   : > { %v207_v53 = vpop.xlane.xlu0 %206  ;;  %v213_v54 = vpop.xlane.xlu1 %212 }
  0xa7   : > { %909 = vpow2.f32 %v266_v51  ;;  %v1156_v55 = vsub.f32 %v1054_v3, %v207_v53  ;;  %v1159_v56 = vsub.f32 %v1061_v6, %v213_v54 }
  0xa8   : > { %911 = vpow2.f32 %v270_v52 }
  0xa9   : > { %v268_v57 = vmul.f32 1.442695, %v1156_v55  ;;  %v272_v58 = vmul.f32 1.442695, %v1159_v56 }
  0xaa   : > { %v216_v59 = vpop.xlane.xlu0 %215  ;;  %v219_v60 = vpop.xlane.xlu1 %218 }
  0xab   : > { %913 = vpow2.f32 %v268_v57  ;;  %v1164_v61 = vsub.f32 %v1068_v9, %v216_v59  ;;  %v1167_v62 = vsub.f32 %v1071_v10, %v219_v60 }
  0xac   : > { %915 = vpow2.f32 %v272_v58 }
  0xad   : > { %v274_v63 = vmul.f32 1.442695, %v1164_v61  ;;  %v276_v0 = vmul.f32 1.442695, %v1167_v62 }
  0xae   : > { %v222_v1 = vpop.xlane.xlu0 %221  ;;  %v225_v2 = vpop.xlane.xlu1 %224 }
  0xaf   : > { %917 = vpow2.f32 %v274_v63  ;;  %v1172_v3 = vsub.f32 %v1078_v13, %v222_v1  ;;  %v1175_v4 = vsub.f32 %v1081_v14, %v225_v2 }
  0xb0   : > { %919 = vpow2.f32 %v276_v0 }
  0xb1   : > { %v1177_v5 = vpop.eup %909  ;;  %v278_v6 = vmul.f32 1.442695, %v1172_v3  ;;  %v280_v7 = vmul.f32 1.442695, %v1175_v4 }
  0xb2   : > { %v1181_v8 = vpop.eup %911  ;;  %v228_v9 = vpop.xlane.xlu0 %227  ;;  %v298_v10 = vsel %vm201_vm0, %v1177_v5, 0.0 }
  0xb3   : > { %v231_v11 = vpop.xlane.xlu1 %230  ;;  %921 = vpow2.f32 %v278_v6  ;;  %v1186_v12 = vsub.f32 %v1088_v17, %v228_v9  ;;  %299 = vadd.xlane.f32.xlu0 %v298_v10  ;;  %v304_v14 = vsel %vm201_vm0, %v1181_v8, 0.0  ;;  %v199_v9 = vld [vmem:[%s1131_s18 + $0x70] sm:$0xff]  ;;  %v200_v10 = vld [vmem:[%s1131_s18 + $0x78] sm:$0xff] }
  0xb4   : > { %v1189_v13 = vsub.f32 %v1091_v18, %v231_v11  ;;  %923 = vpow2.f32 %v280_v7 }
  0xb5   : > { %v1193_v15 = vpop.eup %913  ;;  %v282_v16 = vmul.f32 1.442695, %v1186_v12 }
  0xb6   : > { %v284_v19 = vmul.f32 1.442695, %v1189_v13  ;;  %v1197_v20 = vpop.eup %915  ;;  %v234_v23 = vpop.xlane.xlu0 %233  ;;  %v301_v17 = vsel %vm201_vm0, %v1193_v15, 0.0 }
  0xb7   : > { %v237_v24 = vpop.xlane.xlu1 %236  ;;  %925 = vpow2.f32 %v282_v16  ;;  %v1202_v18 = vsub.f32 %v1098_v21, %v234_v23  ;;  %305 = vadd.xlane.f32.xlu0 %v304_v14  ;;  %302 = vadd.xlane.f32.xlu1 %v301_v17  ;;  %v307_v28 = vsel %vm201_vm0, %v1197_v20, 0.0 }
  0xb8   : > { %v1205_v27 = vsub.f32 %v1101_v22, %v237_v24  ;;  %927 = vpow2.f32 %v284_v19 }
  0xb9   : > { %v1209_v31 = vpop.eup %917  ;;  %v286_v32 = vmul.f32 1.442695, %v1202_v18 }
  0xba   : > { %v288_v33 = vmul.f32 1.442695, %v1205_v27  ;;  %v1213_v34 = vpop.eup %919  ;;  %v240_v35 = vpop.xlane.xlu0 %239  ;;  %v310_v21 = vsel %vm201_vm0, %v1209_v31, 0.0 }
  0xbb   : > { %v243_v36 = vpop.xlane.xlu1 %242  ;;  %929 = vpow2.f32 %v286_v32  ;;  %v1218_v22 = vsub.f32 %v1108_v25, %v240_v35  ;;  %308 = vadd.xlane.f32.xlu1 %v307_v28  ;;  %311 = vadd.xlane.f32.xlu0 %v310_v21  ;;  %v313_v38 = vsel %vm201_vm0, %v1213_v34, 0.0 }
  0xbc   : > { %v1221_v37 = vsub.f32 %v1111_v26, %v243_v36  ;;  %931 = vpow2.f32 %v288_v33 }
  0xbd   : > { %v1225_v39 = vpop.eup %921  ;;  %v290_v40 = vmul.f32 1.442695, %v1218_v22 }
  0xbe   : > { %v292_v41 = vmul.f32 1.442695, %v1221_v37  ;;  %v1229_v42 = vpop.eup %923  ;;  %v246_v43 = vpop.xlane.xlu0 %245  ;;  %v316_v25 = vsel %vm201_vm0, %v1225_v39, 0.0 }
  0xbf   : > { %v249_v44 = vpop.xlane.xlu1 %248  ;;  %933 = vpow2.f32 %v290_v40  ;;  %v1234_v26 = vsub.f32 %v1118_v29, %v246_v43  ;;  %314 = vadd.xlane.f32.xlu1 %v313_v38  ;;  %317 = vadd.xlane.f32.xlu0 %v316_v25  ;;  %v319_v46 = vsel %vm201_vm0, %v1229_v42, 0.0 }
  0xc0   : > { %v1237_v45 = vsub.f32 %v1121_v30, %v249_v44  ;;  %935 = vpow2.f32 %v292_v41 }
  0xc1   : > { %v1241_v47 = vpop.eup %925  ;;  %v294_v48 = vmul.f32 1.442695, %v1234_v26 }
  0xc2   : > { %1574 = vst [vmem:[#allocation2_spill] sm:$0xff] %v1237_v45  ;;  %v296_v51 = vmul.f32 1.442695, %v1237_v45  ;;  %v1245_v52 = vpop.eup %927  ;;  %v322_v29 = vsel %vm201_vm0, %v1241_v47, 0.0 }
  0xc3   : > { %937 = vpow2.f32 %v294_v48  ;;  %320 = vadd.xlane.f32.xlu1 %v319_v46  ;;  %323 = vadd.xlane.f32.xlu0 %v322_v29  ;;  %v325_v30 = vsel %vm201_vm0, %v1245_v52, 0.0  ;;  %v1277_v11 = vpop.permute.xlu1 %496 }
  0xc4   : > { %939 = vpow2.f32 %v296_v51 }
  0xc5   : > { %v1251_v53 = vpop.eup %929 }
  0xc6   : > { %v1253_v54 = vpop.eup %931  ;;  %v328_v57 = vsel %vm201_vm0, %v1251_v53, 0.0  ;;  %v1289_v24 = vpop.permute.xlu0 %493 }
  0xc7   : > { %326 = vadd.xlane.f32.xlu1 %v325_v30  ;;  %329 = vadd.xlane.f32.xlu0 %v328_v57  ;;  %v331_v58 = vsel %vm201_vm0, %v1253_v54, 0.0  ;;  %v1279_v14 = vpop.permute.xlu1 %499 }
  0xc9   : > { %v1259_v59 = vpop.eup %933 }
  0xca   : > { %v1261_v60 = vpop.eup %935  ;;  %v334_v63 = vsel %vm201_vm0, %v1259_v59, 0.0  ;;  %v1293_v32 = vpop.permute.xlu0 %520 }
  0xcb   : > { %332 = vadd.xlane.f32.xlu1 %v331_v58  ;;  %335 = vadd.xlane.f32.xlu0 %v334_v63  ;;  %v337_v0 = vsel %vm201_vm0, %v1261_v60, 0.0  ;;  %v1281_v16 = vpop.permute.xlu1 %502 }
  0xcd   : > { %v1267_v1 = vpop.eup %937 }
  0xce   : > { %v1269_v2 = vpop.eup %939  ;;  %v340_v6 = vsel %vm201_vm0, %v1267_v1, 0.0  ;;  %v1297_v35 = vpop.permute.xlu0 %526 }
  0xcf   : > { %338 = vadd.xlane.f32.xlu1 %v337_v0  ;;  %341 = vadd.xlane.f32.xlu0 %v340_v6  ;;  %v343_v7 = vsel %vm201_vm0, %v1269_v2, 0.0  ;;  %v1283_v19 = vpop.permute.xlu1 %505 }
  0xd2   : > { %v1301_v36 = vpop.permute.xlu0 %532 }
  0xd3   : > { %344 = vadd.xlane.f32.xlu1 %v343_v7  ;;  %v1285_v23 = vpop.permute.xlu1 %508  ;;  %1575 = vst [vmem:[#allocation3_spill] sm:$0xff] %v1301_v36 }
  0xd7   : > { %v1287_v17 = vpop.permute.xlu1 %511 }
  0xdb   : > { %v1291_v28 = vpop.permute.xlu1 %514 }
  0xdf   : > { %v1295_v33 = vpop.permute.xlu1 %517 }
  0xe3   : > { %v1299_v21 = vpop.permute.xlu1 %523 }
  0xe4   : > { %535 = vperm.xlu1 %908, %v199_v9  }
  0xe5   : > { %538 = vperm.xlu0 %907, %v200_v10  }
  0xe7   : > { %v1303_v38 = vpop.permute.xlu1 %529 }
 0x140   : > { %v300_v40 = vpop.xlane.xlu0 %299 }
 0x141   : > { %941 = vlog2.f32 %v300_v40 }
 0x142   : > { %943 = vrcp.f32 %v300_v40 }
 0x144   : > { %v303_v41 = vpop.xlane.xlu1 %302  ;;  %v306_v43 = vpop.xlane.xlu0 %305 }
 0x145   : > { %945 = vlog2.f32 %v303_v41 }
 0x146   : > { %947 = vrcp.f32 %v303_v41 }
 0x147   : > { %949 = vlog2.f32 %v306_v43 }
 0x148   : > { %951 = vrcp.f32 %v306_v43  ;;  %v309_v25 = vpop.xlane.xlu1 %308  ;;  %v312_v44 = vpop.xlane.xlu0 %311 }
 0x149   : > { %953 = vrcp.f32 %v309_v25 }
 0x14a   : > { %955 = vlog2.f32 %v309_v25 }
 0x14b   : > { %v942_v46 = vpop.eup %941  ;;  %957 = vrcp.f32 %v312_v44 }
 0x14c   : > { %v944_v48 = vpop.eup %943  ;;  %v315_v51 = vpop.xlane.xlu1 %314  ;;  %959 = vlog2.f32 %v312_v44  ;;  %v347_v57 = vmul.f32 0.6931472, %v942_v46 }
 0x14d   : > { %v318_v29 = vpop.xlane.xlu0 %317  ;;  %v395_v30 = vmul.f32 %v944_v48, %v1177_v5  ;;  %961 = vrcp.f32 %v315_v51 }
 0x14e   : > { %963 = vlog2.f32 %v315_v51  ;;  %v378_v25 = vsub.f32 %v1148_v49, %v347_v57 }
 0x14f   : > { %v946_v58 = vpop.eup %945  ;;  %v426_v63 = vsub.f32 1.0, %v395_v30  ;;  %965 = vlog2.f32 %v318_v29 }
 0x150   : > { %v948_v0 = vpop.eup %947  ;;  %v321_v6 = vpop.xlane.xlu1 %320  ;;  %v349_v43 = vmul.f32 0.6931472, %v946_v58  ;;  %967 = vrcp.f32 %v318_v29 }
 0x151   : > { %v324_v7 = vpop.xlane.xlu0 %323  ;;  %v950_v9 = vpop.eup %949  ;;  %v442_v10 = vmax.f32 %v426_v63, 0.0  ;;  %v397_v40 = vmul.f32 %v948_v0, %v1193_v15  ;;  %969 = vlog2.f32 %v321_v6 }
 0x152   : > { %v952_v41 = vpop.eup %951  ;;  %v351_v30 = vmul.f32 0.6931472, %v950_v9  ;;  %971 = vrcp.f32 %v321_v6  ;;  %v379_v49 = vsub.f32 %v1156_v55, %v349_v43 }
 0x153   : > { %v458_v5 = vmul.f32 %v442_v10, %v442_v10  ;;  %v427_v44 = vsub.f32 1.0, %v397_v40  ;;  %v399_v46 = vmul.f32 %v952_v41, %v1181_v8  ;;  %v954_v48 = vpop.eup %953  ;;  %973 = vlog2.f32 %v324_v7 }
 0x154   : > { %v327_v51 = vpop.xlane.xlu1 %326  ;;  %v956_v36 = vpop.eup %955  ;;  %975 = vrcp.f32 %v324_v7  ;;  %v401_v29 = vmul.f32 %v954_v48, %v1197_v20  ;;  %v380_v41 = vsub.f32 %v1151_v50, %v351_v30 }
 0x155   : > { %v330_v45 = vpop.xlane.xlu0 %329  ;;  %v1309_v63 = vmul.f32 %v458_v5, %v378_v25  ;;  %v443_v15 = vmax.f32 %v427_v44, 0.0  ;;  %v428_v0 = vsub.f32 1.0, %v399_v46  ;;  %v958_v58 = vpop.eup %957  ;;  %977 = vrcp.f32 %v327_v51 }
 0x156   : > { %v960_v57 = vpop.eup %959  ;;  %v353_v10 = vmul.f32 0.6931472, %v956_v36  ;;  %v429_v25 = vsub.f32 1.0, %v401_v29  ;;  %979 = vlog2.f32 %v327_v51  ;;  %v403_v20 = vmul.f32 %v958_v58, %v1209_v31 }
 0x157   : > { %v620_v8 = vsel %vm201_vm0, %v1309_v63, 0.0  ;;  %v459_v6 = vmul.f32 %v443_v15, %v443_v15  ;;  %v444_v9 = vmax.f32 %v428_v0, 0.0  ;;  %v962_v5 = vpop.eup %961  ;;  %v355_v44 = vmul.f32 0.6931472, %v960_v57 }
 0x158   : > { %621 = vadd.xlane.f32.xlu0 %v620_v8  ;;  %v333_v40 = vpop.xlane.xlu1 %332  ;;  %v964_v43 = vpop.eup %963  ;;  %981 = vrcp.f32 %v330_v45  ;;  %v445_v46 = vmax.f32 %v429_v25, 0.0  ;;  %v430_v50 = vsub.f32 1.0, %v403_v20  ;;  %v381_v51 = vsub.f32 %v1159_v56, %v353_v10 }
 0x159   : > { %v1316_v7 = vmul.f32 %v459_v6, %v379_v49  ;;  %v460_v55 = vmul.f32 %v444_v9, %v444_v9  ;;  %v966_v48 = vpop.eup %965  ;;  %983 = vlog2.f32 %v330_v45  ;;  %v336_v15 = vpop.xlane.xlu0 %335  ;;  %v405_v31 = vmul.f32 %v962_v5, %v1213_v34 }
 0x15a   : > { %v968_v30 = vpop.eup %967  ;;  %985 = vrcp.f32 %v333_v40  ;;  %v461_v49 = vmul.f32 %v445_v46, %v445_v46  ;;  %v446_v57 = vmax.f32 %v430_v50, 0.0  ;;  %v357_v6 = vmul.f32 0.6931472, %v964_v43 }
 0x15b   : > { %v623_v36 = vsel %vm201_vm0, %v1316_v7, 0.0  ;;  %v1321_v0 = vmul.f32 %v460_v55, %v380_v41  ;;  %v970_v58 = vpop.eup %969  ;;  %987 = vlog2.f32 %v333_v40  ;;  %v431_v41 = vsub.f32 1.0, %v405_v31 }
 0x15c   : > { %624 = vadd.xlane.f32.xlu1 %v623_v36  ;;  %v339_v29 = vpop.xlane.xlu1 %338  ;;  %v972_v8 = vpop.eup %971  ;;  %989 = vrcp.f32 %v336_v15  ;;  %v1327_v9 = vmul.f32 %v461_v49, %v381_v51  ;;  %v382_v56 = vsub.f32 %v1164_v61, %v355_v44  ;;  %v462_v10 = vmul.f32 %v446_v57, %v446_v57 }
 0x15d   : > { %v626_v45 = vsel %vm201_vm0, %v1321_v0, 0.0  ;;  %v974_v25 = vpop.eup %973  ;;  %991 = vlog2.f32 %v336_v15  ;;  %v407_v34 = vmul.f32 %v968_v30, %v1225_v39  ;;  %v359_v5 = vmul.f32 0.6931472, %v966_v48 }
 0x15e   : > { %627 = vadd.xlane.f32.xlu0 %v626_v45  ;;  %v976_v40 = vpop.eup %975  ;;  %993 = vrcp.f32 %v339_v29  ;;  %v629_v55 = vsel %vm201_vm0, %v1327_v9, 0.0  ;;  %v447_v20 = vmax.f32 %v431_v41, 0.0  ;;  %v1333_v46 = vmul.f32 %v462_v10, %v382_v56 }
 0x15f   : > { %v978_v43 = vpop.eup %977  ;;  %995 = vlog2.f32 %v339_v29  ;;  %v432_v36 = vsub.f32 1.0, %v407_v34  ;;  %v409_v15 = vmul.f32 %v972_v8, %v1229_v42  ;;  %v361_v50 = vmul.f32 0.6931472, %v970_v58 }
 0x160   : > { %630 = vadd.xlane.f32.xlu1 %v629_v55  ;;  %v383_v61 = vsub.f32 %v1167_v62, %v357_v6  ;;  %v463_v44 = vmul.f32 %v447_v20, %v447_v20  ;;  %v980_v39 = vpop.eup %979  ;;  %v632_v48 = vsel %vm201_vm0, %v1333_v46, 0.0  ;;  %v411_v49 = vmul.f32 %v976_v40, %v1241_v47 }
 0x161   : > { %v448_v30 = vmax.f32 %v432_v36, 0.0  ;;  %v433_v51 = vsub.f32 1.0, %v409_v15  ;;  %v363_v45 = vmul.f32 0.6931472, %v974_v25  ;;  %v413_v57 = vmul.f32 %v978_v43, %v1245_v52 }
 0x162   : > { %v982_v31 = vpop.eup %981  ;;  %633 = vadd.xlane.f32.xlu0 %v632_v48  ;;  %v1340_v29 = vmul.f32 %v463_v44, %v383_v61  ;;  %v490_v58 = vlaneseq  ;;  %v384_v62 = vsub.f32 %v1172_v3, %v359_v5  ;;  %v365_v56 = vmul.f32 0.6931472, %v980_v39 }
 0x163   : > { %v984_v42 = vpop.eup %983  ;;  %v464_v8 = vmul.f32 %v448_v30, %v448_v30  ;;  %v449_v6 = vmax.f32 %v433_v51, 0.0  ;;  %v434_v34 = vsub.f32 1.0, %v411_v49  ;;  %v435_v47 = vsub.f32 1.0, %v413_v57 }
 0x164   : > { %v986_v41 = vpop.eup %985  ;;  %v635_v10 = vsel %vm201_vm0, %v1340_v29, 0.0  ;;  %v385_v55 = vsub.f32 %v1175_v4, %v361_v50  ;;  %v415_v20 = vmul.f32 %v982_v31, %v1251_v53  ;;  %v367_v3 = vmul.f32 0.6931472, %v984_v42 }
 0x165   : > { %v988_v40 = vpop.eup %987  ;;  %636 = vadd.xlane.f32.xlu1 %v635_v10  ;;  %v1346_v25 = vmul.f32 %v464_v8, %v384_v62  ;;  %v465_v52 = vmul.f32 %v449_v6, %v449_v6  ;;  %v386_v5 = vsub.f32 %v1186_v12, %v363_v45  ;;  %v450_v36 = vmax.f32 %v434_v34, 0.0 }
 0x166   : > { %v990_v43 = vpop.eup %989  ;;  %v451_v15 = vmax.f32 %v435_v47, 0.0  ;;  %v436_v48 = vsub.f32 1.0, %v415_v20  ;;  %v417_v30 = vmul.f32 %v986_v41, %v1253_v54  ;;  %v369_v4 = vmul.f32 0.6931472, %v988_v40  ;;  %v342_v41 = vpop.xlane.xlu0 %341 }
 0x167   : > { %v992_v61 = vpop.eup %991  ;;  %v638_v44 = vsel %vm201_vm0, %v1346_v25, 0.0  ;;  %v1353_v39 = vmul.f32 %v465_v52, %v385_v55  ;;  %v466_v50 = vmul.f32 %v450_v36, %v450_v36  ;;  %v387_v53 = vsub.f32 %v1189_v13, %v365_v56  ;;  %v345_v52 = vpop.xlane.xlu1 %344 }
 0x168   : > { %v994_v51 = vpop.eup %993  ;;  %639 = vadd.xlane.f32.xlu0 %v638_v44  ;;  %v467_v49 = vmul.f32 %v451_v15, %v451_v15  ;;  %v452_v45 = vmax.f32 %v436_v48, 0.0  ;;  %v437_v57 = vsub.f32 1.0, %v417_v30  ;;  %v419_v42 = vmul.f32 %v990_v43, %v1259_v59 }
 0x169   : > { %v996_v31 = vpop.eup %995  ;;  %v641_v12 = vsel %vm201_vm0, %v1353_v39, 0.0  ;;  %v371_v62 = vmul.f32 0.6931472, %v992_v61  ;;  %v1360_v8 = vmul.f32 %v466_v50, %v386_v5  ;;  %v388_v6 = vsub.f32 %v1202_v18, %v367_v3 }
 0x16a   : > { %642 = vadd.xlane.f32.xlu1 %v641_v12  ;;  %v1362_v54 = vmul.f32 %v467_v49, %v387_v53  ;;  %v468_v10 = vmul.f32 %v452_v45, %v452_v45  ;;  %v453_v13 = vmax.f32 %v437_v57, 0.0  ;;  %v438_v56 = vsub.f32 1.0, %v419_v42 }
 0x16b   : > { %v421_v34 = vmul.f32 %v994_v51, %v1261_v60  ;;  %v373_v47 = vmul.f32 0.6931472, %v996_v31  ;;  %v644_v40 = vsel %vm201_vm0, %v1360_v8, 0.0  ;;  %v389_v55 = vsub.f32 %v1205_v27, %v369_v4 }
 0x16c   : > { %v647_v59 = vsel %vm201_vm0, %v1362_v54, 0.0  ;;  %645 = vadd.xlane.f32.xlu0 %v644_v40  ;;  %v1371_v20 = vmul.f32 %v468_v10, %v388_v6  ;;  %v469_v18 = vmul.f32 %v453_v13, %v453_v13  ;;  %v454_v43 = vmax.f32 %v438_v56, 0.0 }
 0x16d   : > { %v439_v3 = vsub.f32 1.0, %v421_v34  ;;  %997 = vrcp.f32 %v342_v41  ;;  %v390_v60 = vsub.f32 %v1218_v22, %v371_v62  ;;  %v1379_v27 = vand.u32 127, %v490_v58 }
 0x16e   : > { %648 = vadd.xlane.f32.xlu1 %v647_v59  ;;  %v650_v5 = vsel %vm201_vm0, %v1371_v20, 0.0  ;;  %v1376_v36 = vmul.f32 %v469_v18, %v389_v55  ;;  %v470_v15 = vmul.f32 %v454_v43, %v454_v43  ;;  %999 = vrcp.f32 %v345_v52  ;;  %v536_v59 = vpop.permute.xlu1 %535  ;;  %v539_v18 = vpop.permute.xlu0 %538 }
 0x16f   : > { %v455_v61 = vmax.f32 %v439_v3, 0.0  ;;  %v391_v30 = vsub.f32 %v1221_v37, %v373_v47  ;;  %vm541_vm1 = vcmp.eq.s32.totalorder %v1379_v27, %v1277_v11  ;;  %vm540_vm2 = vcmp.eq.s32.totalorder %v1379_v27, %v1289_v24  ;;  %v1576_v47 = vld [vmem:[#allocation2_spill] sm:$0xff] }
 0x170   : > { %651 = vadd.xlane.f32.xlu0 %v650_v5  ;;  %v653_v44 = vsel %vm201_vm0, %v1376_v36, 0.0  ;;  %v1383_v48 = vmul.f32 %v470_v15, %v390_v60  ;;  %v557_v53 = vsel %vm541_vm1, %v1316_v7, 0.0  ;;  %v556_v37 = vsel %vm540_vm2, %v1309_v63, 0.0 }
 0x171   : > { %v471_v22 = vmul.f32 %v455_v61, %v455_v61  ;;  %vm542_vm3 = vcmp.eq.s32.totalorder %v1379_v27, %v1279_v14  ;;  %v575_v31 = vsel %vm201_vm0, %v557_v53, 0.0  ;;  %vm543_vm4 = vcmp.eq.s32.totalorder %v1379_v27, %v1281_v16 }
 0x172   : > { %654 = vadd.xlane.f32.xlu1 %v653_v44  ;;  %v656_v51 = vsel %vm201_vm0, %v1383_v48, 0.0  ;;  %v572_v11 = vsel %vm201_vm0, %v556_v37, 0.0  ;;  %v558_v24 = vsel %vm542_vm3, %v1321_v0, 0.0  ;;  %1001 = vlog2.f32 %v342_v41 }
 0x173   : > { %v1388_v4 = vmul.f32 %v471_v22, %v391_v30  ;;  %v559_v7 = vsel %vm543_vm4, %v1327_v9, 0.0  ;;  %1003 = vlog2.f32 %v345_v52  ;;  %vm544_vm5 = vcmp.eq.s32.totalorder %v1379_v27, %v1283_v19 }
 0x174   : > { %657 = vadd.xlane.f32.xlu0 %v656_v51  ;;  %v578_v14 = vsel %vm201_vm0, %v558_v24, 0.0  ;;  %vm545_vm6 = vcmp.eq.s32.totalorder %v1379_v27, %v1285_v23  ;;  %v581_v16 = vsel %vm201_vm0, %v559_v7, 0.0  ;;  %v560_v63 = vsel %vm544_vm5, %v1333_v46, 0.0 }
 0x175   : > { %v659_v50 = vsel %vm201_vm0, %v1388_v4, 0.0  ;;  %v561_v45 = vsel %vm545_vm6, %v1340_v29, 0.0  ;;  %vm546_vm7 = vcmp.eq.s32.totalorder %v1379_v27, %v1287_v17  ;;  %v584_v19 = vsel %vm201_vm0, %v560_v63, 0.0 }
 0x176   : > { %660 = vadd.xlane.f32.xlu1 %v659_v50  ;;  %vm547_vm8 = vcmp.eq.s32.totalorder %v1379_v27, %v1291_v28  ;;  %v587_v23 = vsel %vm201_vm0, %v561_v45, 0.0  ;;  %v562_v46 = vsel %vm546_vm7, %v1346_v25, 0.0  ;;  %vm548_vm9 = vcmp.eq.s32.totalorder %v1379_v27, %v1295_v33 }
 0x177   : > { %v998_v49 = vpop.eup %997  ;;  %vm549_vm10 = vcmp.eq.s32.totalorder %v1379_v27, %v1293_v32  ;;  %v564_v25 = vsel %vm548_vm9, %v1360_v8, 0.0  ;;  %vm550_vm11 = vcmp.eq.s32.totalorder %v1379_v27, %v1299_v21  ;;  %vm551_vm12 = vcmp.eq.s32.totalorder %v1379_v27, %v1297_v35  ;;  %v1577_v35 = vld [vmem:[#allocation3_spill] sm:$0xff] }
 0x178   : > { %576 = vadd.xlane.f32.xlu0 %v575_v31  ;;  %v1000_v12 = vpop.eup %999  ;;  %v423_v0 = vmul.f32 %v998_v49, %v1267_v1  ;;  %v563_v1 = vsel %vm547_vm8, %v1353_v39, 0.0  ;;  %v565_v39 = vsel %vm549_vm10, %v1362_v54, 0.0  ;;  %v596_v10 = vsel %vm201_vm0, %v564_v25, 0.0 }
 0x179   : > { %v425_v9 = vmul.f32 %v1000_v12, %v1269_v2  ;;  %v590_v2 = vsel %vm201_vm0, %v562_v46, 0.0  ;;  %v593_v28 = vsel %vm201_vm0, %v563_v1, 0.0  ;;  %v599_v32 = vsel %vm201_vm0, %v565_v39, 0.0 }
 0x17a   : > { %573 = vadd.xlane.f32.xlu1 %v572_v11  ;;  %v440_v57 = vsub.f32 1.0, %v423_v0  ;;  %v566_v8 = vsel %vm550_vm11, %v1371_v20, 0.0  ;;  %v567_v54 = vsel %vm551_vm12, %v1376_v36, 0.0  ;;  %vm552_vm13 = vcmp.eq.s32.totalorder %v1379_v27, %v1303_v38 }
 0x17b   : > { %v441_v29 = vsub.f32 1.0, %v425_v9  ;;  %v602_v21 = vsel %vm201_vm0, %v566_v8, 0.0  ;;  %vm553_vm14 = vcmp.eq.s32.totalorder %v1379_v27, %v1577_v35  ;;  %v605_v55 = vsel %vm201_vm0, %v567_v54, 0.0 }
 0x17c   : > { %579 = vadd.xlane.f32.xlu0 %v578_v14  ;;  %v1002_v42 = vpop.eup %1001  ;;  %v456_v62 = vmax.f32 %v440_v57, 0.0  ;;  %v568_v52 = vsel %vm552_vm13, %v1383_v48, 0.0  ;;  %vm554_vm15 = vcmp.eq.s32.totalorder %v1379_v27, %v536_v59  ;;  %vm555_vm1 = vcmp.eq.s32.totalorder %v1379_v27, %v539_v18 }
 0x17d   : > { %v1004_v17 = vpop.eup %1003  ;;  %v457_v6 = vmax.f32 %v441_v29, 0.0  ;;  %v375_v41 = vmul.f32 0.6931472, %v1002_v42  ;;  %v608_v38 = vsel %vm201_vm0, %v568_v52, 0.0  ;;  %v1467_v31 = vshrl.u32 %v490_v58, 7 }
 0x17e   : > { %582 = vadd.xlane.f32.xlu1 %v581_v16  ;;  %v377_v33 = vmul.f32 0.6931472, %v1004_v17  ;;  %v472_v13 = vmul.f32 %v456_v62, %v456_v62  ;;  %v1480_v16 = vstv %s895_s19  ;;  %vm799_vm2 = vcmask 7168  }
 0x17f   : > { %v473_v56 = vmul.f32 %v457_v6, %v457_v6  ;;  %v392_v34 = vsub.f32 %v1234_v26, %v375_v41  ;;  %v569_v26 = vsel %vm553_vm14, %v1388_v4, 0.0  ;;  %v735_v7 = vadd.s32 8, %v1467_v31 }
 0x180   : > { %585 = vadd.xlane.f32.xlu0 %v584_v19  ;;  %v393_v40 = vsub.f32 %v1576_v47, %v377_v33  ;;  %v611_v3 = vsel %vm201_vm0, %v569_v26, 0.0  ;;  %v736_v63 = vadd.s32 16, %v1467_v31  ;;  %v737_v0 = vadd.s32 24, %v1467_v31 }
 0x181   : > { %v488_v20 = vmul.f32 %v472_v13, %v392_v34  ;;  %v752_v58 = vadd.s32 %v1480_v16, %v735_v7  ;;  %v738_v17 = vadd.s32 32, %v1467_v31  ;;  %v739_v62 = vadd.s32 40, %v1467_v31 }
 0x182   : > { %588 = vadd.xlane.f32.xlu1 %v587_v23  ;;  %v489_v43 = vmul.f32 %v473_v56, %v393_v40  ;;  %v751_v23 = vadd.s32 %v1480_v16, %v1467_v31  ;;  %v753_v29 = vadd.s32 %v1480_v16, %v736_v63  ;;  %v740_v35 = vadd.s32 48, %v1467_v31 }
 0x183   : > { %v570_v60 = vsel %vm554_vm15, %v488_v20, 0.0  ;;  %v662_v61 = vsel %vm201_vm0, %v488_v20, 0.0  ;;  %v755_v56 = vadd.s32 %v1480_v16, %v738_v17  ;;  %v756_v40 = vadd.s32 %v1480_v16, %v739_v62 }
 0x184   : > { %591 = vadd.xlane.f32.xlu0 %v590_v2  ;;  %v571_v5 = vsel %vm555_vm1, %v489_v43, 0.0  ;;  %v614_v36 = vsel %vm201_vm0, %v570_v60, 0.0  ;;  %v665_v44 = vsel %vm201_vm0, %v489_v43, 0.0  ;;  %v754_v2 = vadd.s32 %v1480_v16, %v737_v0 }
 0x185   : > { %v617_v15 = vsel %vm201_vm0, %v571_v5, 0.0  ;;  %vm768_vm0 = vcmp.lt.s32.totalorder %v752_v58, 512  ;;  %vm767_vm3 = vcmp.lt.s32.totalorder %v751_v23, 512  ;;  %vm769_vm4 = vcmp.lt.s32.totalorder %v753_v29, 512 }
 0x186   : > { %594 = vadd.xlane.f32.xlu1 %v593_v28  ;;  %vm770_vm5 = vcmp.lt.s32.totalorder %v754_v2, 512  ;;  %v741_v18 = vadd.s32 56, %v1467_v31  ;;  %vm771_vm6 = vcmp.lt.s32.totalorder %v755_v56, 512  ;;  %vm772_vm7 = vcmp.lt.s32.totalorder %v756_v40, 512 }
 0x187   : > { %v747_v56 = vadd.s32 104, %v1467_v31 }
 0x188   : > { %597 = vadd.xlane.f32.xlu0 %v596_v10 }
 0x18a   : > { %600 = vadd.xlane.f32.xlu1 %v599_v32 }
 0x18c   : > { %603 = vadd.xlane.f32.xlu0 %v602_v21 }
 0x18e   : > { %606 = vadd.xlane.f32.xlu1 %v605_v55 }
 0x190   : > { %609 = vadd.xlane.f32.xlu0 %v608_v38 }
 0x192   : > { %612 = vadd.xlane.f32.xlu1 %v611_v3  ;;  %v742_v3 = vadd.s32 64, %v1467_v31 }
 0x194   : > { %615 = vadd.xlane.f32.xlu0 %v614_v36  ;;  %v743_v36 = vadd.s32 72, %v1467_v31  ;;  %v759_v58 = vadd.s32 %v1480_v16, %v742_v3 }
 0x196   : > { %618 = vadd.xlane.f32.xlu1 %v617_v15  ;;  %vm775_vm10 = vcmp.lt.s32.totalorder %v759_v58, 512 }
 0x198   : > { %663 = vadd.xlane.f32.xlu0 %v662_v61 }
 0x19a   : > { %666 = vadd.xlane.f32.xlu1 %v665_v44  ;;  %v757_v44 = vadd.s32 %v1480_v16, %v740_v35 }
 0x19c   : > { %vm773_vm8 = vcmp.lt.s32.totalorder %v757_v44, 512  ;;  %v748_v44 = vadd.s32 112, %v1467_v31 }
 0x1e5   : > { %v622_v27 = vpop.xlane.xlu0 %621 }
 0x1e6   : > { %v668_v57 = vmul.f32 0.011764706, %v622_v27 }
 0x1e9   : > { %v625_v48 = vpop.xlane.xlu1 %624 }
 0x1ea   : > { %v669_v9 = vmul.f32 0.011764706, %v625_v48 }
 0x1eb   : > { %v628_v30 = vpop.xlane.xlu0 %627 }
 0x1ec   : > { %v670_v39 = vmul.f32 0.011764706, %v628_v30 }
 0x1ed   : > { %v631_v22 = vpop.xlane.xlu1 %630 }
 0x1ee   : > { %v671_v10 = vmul.f32 0.011764706, %v631_v22 }
 0x1ef   : > { %v634_v51 = vpop.xlane.xlu0 %633 }
 0x1f0   : > { %v672_v59 = vmul.f32 0.011764706, %v634_v51  ;;  %v758_v51 = vadd.s32 %v1480_v16, %v741_v18 }
 0x1f2   : > { %v637_v4 = vpop.xlane.xlu1 %636  ;;  %vm774_vm9 = vcmp.lt.s32.totalorder %v758_v51, 512 }
 0x1f3   : > { %v673_v26 = vmul.f32 0.011764706, %v637_v4 }
 0x1f5   : > { %v1458_v50 = vpop.xlane.xlu0 %639 }
 0x1f6   : > { %v674_v48 = vmul.f32 0.011764706, %v1458_v50  ;;  %v744_v50 = vadd.s32 80, %v1467_v31 }
 0x1f7   : > { %v1460_v53 = vpop.xlane.xlu1 %642 }
 0x1f8   : > { %v675_v7 = vmul.f32 0.011764706, %v1460_v53  ;;  %v745_v53 = vadd.s32 88, %v1467_v31 }
 0x1f9   : > { %v1462_v37 = vpop.xlane.xlu0 %645 }
 0x1fb   : > { %v1464_v49 = vpop.xlane.xlu1 %648 }
 0x1fc   : > { %v677_v17 = vmul.f32 0.011764706, %v1464_v49 }
 0x1fd   : > { %v1469_v11 = vpop.xlane.xlu0 %651 }
 0x1fe   : > { %v678_v49 = vmul.f32 0.011764706, %v1469_v11 }
 0x1ff   : > { %v1471_v24 = vpop.xlane.xlu1 %654 }
 0x201   : > { %v1475_v12 = vpop.xlane.xlu0 %657 }
 0x203   : > { %v1478_v14 = vpop.xlane.xlu1 %660 }
 0x205   : > { %v577_v45 = vpop.xlane.xlu0 %576 }
 0x206   : > { %v685_v19 = vmul.f32 0.7882353, %v577_v45 }
 0x207   : > { %v574_v46 = vpop.xlane.xlu1 %573 }
 0x208   : > { %v684_v1 = vmul.f32 0.7882353, %v574_v46  ;;  %v701_v42 = vadd.f32 %v685_v19, %v669_v9  ;;  %v760_v19 = vadd.s32 %v1480_v16, %v743_v36 }
 0x209   : > { %v580_v25 = vpop.xlane.xlu0 %579 }
 0x20a   : > { %v700_v28 = vadd.f32 %v684_v1, %v668_v57  ;;  %v717_v6 = vsub.f32 0.0, %v701_v42  ;;  %v686_v41 = vmul.f32 0.7882353, %v580_v25  ;;  %v676_v1 = vmul.f32 0.011764706, %v1462_v37 }
 0x20b   : > { %v583_v33 = vpop.xlane.xlu1 %582  ;;  %vm776_vm11 = vcmp.lt.s32.totalorder %v760_v19, 512 }
 0x20c   : > { %v716_v32 = vsub.f32 0.0, %v700_v28  ;;  %v687_v8 = vmul.f32 0.7882353, %v583_v33  ;;  %v784_v13 = vsel %vm768_vm0, %v717_v6, 0.0  ;;  %v702_v54 = vadd.f32 %v686_v41, %v670_v39 }
 0x20d   : > { %801 = vst.msk [vmem:[%s1495_s22 + $0x8] sm:$0xff] %vm799_vm2, %v784_v13  ;;  %v586_v47 = vpop.xlane.xlu0 %585  ;;  %v761_v6 = vadd.s32 %v1480_v16, %v744_v50 }
 0x20e   : > { %v783_v34 = vsel %vm767_vm3, %v716_v32, 0.0  ;;  %v703_v21 = vadd.f32 %v687_v8, %v671_v10  ;;  %v718_v55 = vsub.f32 0.0, %v702_v54  ;;  %v688_v52 = vmul.f32 0.7882353, %v586_v47 }
 0x20f   : > { %800 = vst.msk [vmem:[%s1495_s22] sm:$0xff] %vm799_vm2, %v783_v34  ;;  %v589_v20 = vpop.xlane.xlu1 %588  ;;  %v762_v10 = vadd.s32 %v1480_v16, %v745_v53  ;;  %v746_v32 = vadd.s32 96, %v1467_v31  ;;  %v679_v34 = vmul.f32 0.011764706, %v1471_v24  ;;  %vm777_vm12 = vcmp.lt.s32.totalorder %v761_v6, 512 }
 0x210   : > { %v719_v43 = vsub.f32 0.0, %v703_v21  ;;  %v689_v38 = vmul.f32 0.7882353, %v589_v20  ;;  %v785_v60 = vsel %vm769_vm4, %v718_v55, 0.0  ;;  %v704_v5 = vadd.f32 %v688_v52, %v672_v59 }
 0x211   : > { %802 = vst.msk [vmem:[%s1495_s22 + $0x10] sm:$0xff] %vm799_vm2, %v785_v60  ;;  %v592_v27 = vpop.xlane.xlu0 %591  ;;  %vm778_vm13 = vcmp.lt.s32.totalorder %v762_v10, 512  ;;  %v763_v55 = vadd.s32 %v1480_v16, %v746_v32  ;;  %v680_v20 = vmul.f32 0.011764706, %v1475_v12 }
 0x212   : > { %v786_v15 = vsel %vm770_vm5, %v719_v43, 0.0  ;;  %v705_v61 = vadd.f32 %v689_v38, %v673_v26  ;;  %v720_v30 = vsub.f32 0.0, %v704_v5  ;;  %v690_v22 = vmul.f32 0.7882353, %v592_v27 }
 0x213   : > { %803 = vst.msk [vmem:[%s1495_s22 + $0x18] sm:$0xff] %vm799_vm2, %v786_v15  ;;  %v595_v4 = vpop.xlane.xlu1 %594  ;;  %v764_v26 = vadd.s32 %v1480_v16, %v747_v56  ;;  %v681_v38 = vmul.f32 0.011764706, %v1478_v14  ;;  %vm779_vm14 = vcmp.lt.s32.totalorder %v763_v55, 512 }
 0x214   : > { %v721_v63 = vsub.f32 0.0, %v705_v61  ;;  %v691_v0 = vmul.f32 0.7882353, %v595_v4  ;;  %v787_v45 = vsel %vm771_vm6, %v720_v30, 0.0  ;;  %v706_v9 = vadd.f32 %v690_v22, %v674_v48 }
 0x215   : > { %804 = vst.msk [vmem:[%s1495_s22 + $0x20] sm:$0xff] %vm799_vm2, %v787_v45  ;;  %v598_v57 = vpop.xlane.xlu0 %597  ;;  %vm780_vm15 = vcmp.lt.s32.totalorder %v764_v26, 512  ;;  %v749_v48 = vadd.s32 120, %v1467_v31  ;;  %v765_v4 = vadd.s32 %v1480_v16, %v748_v44 }
 0x216   : > { %v788_v23 = vsel %vm772_vm7, %v721_v63, 0.0  ;;  %v707_v46 = vadd.f32 %v691_v0, %v675_v7  ;;  %v722_v29 = vsub.f32 0.0, %v706_v9  ;;  %v692_v42 = vmul.f32 0.7882353, %v598_v57 }
 0x217   : > { %805 = vst.msk [vmem:[%s1495_s22 + $0x28] sm:$0xff] %vm799_vm2, %v788_v23  ;;  %v601_v2 = vpop.xlane.xlu1 %600  ;;  %v766_v58 = vadd.s32 %v1480_v16, %v749_v48  ;;  %vm781_vm1 = vcmp.lt.s32.totalorder %v765_v4, 512 }
 0x218   : > { %v723_v28 = vsub.f32 0.0, %v707_v46  ;;  %v693_v25 = vmul.f32 0.7882353, %v601_v2  ;;  %v789_v62 = vsel %vm773_vm8, %v722_v29, 0.0  ;;  %v708_v39 = vadd.f32 %v692_v42, %v676_v1 }
 0x219   : > { %806 = vst.msk [vmem:[%s1495_s22 + $0x30] sm:$0xff] %vm799_vm2, %v789_v62  ;;  %v604_v33 = vpop.xlane.xlu0 %603  ;;  %vm782_vm0 = vcmp.lt.s32.totalorder %v766_v58, 512 }
 0x21a   : > { %v790_v37 = vsel %vm774_vm9, %v723_v28, 0.0  ;;  %v709_v41 = vadd.f32 %v693_v25, %v677_v17  ;;  %v724_v8 = vsub.f32 0.0, %v708_v39  ;;  %v694_v13 = vmul.f32 0.7882353, %v604_v33 }
 0x21b   : > { %807 = vst.msk [vmem:[%s1495_s22 + $0x38] sm:$0xff] %vm799_vm2, %v790_v37  ;;  %v607_v54 = vpop.xlane.xlu1 %606 }
 0x21c   : > { %v725_v21 = vsub.f32 0.0, %v709_v41  ;;  %v695_v47 = vmul.f32 0.7882353, %v607_v54  ;;  %v791_v40 = vsel %vm775_vm10, %v724_v8, 0.0  ;;  %v710_v35 = vadd.f32 %v694_v13, %v678_v49 }
 0x21d   : > { %808 = vst.msk [vmem:[%s1495_s22 + $0x40] sm:$0xff] %vm799_vm2, %v791_v40  ;;  %v610_v52 = vpop.xlane.xlu0 %609 }
 0x21e   : > { %v792_v11 = vsel %vm776_vm11, %v725_v21, 0.0  ;;  %v711_v59 = vadd.f32 %v695_v47, %v679_v34  ;;  %v726_v24 = vsub.f32 0.0, %v710_v35  ;;  %v696_v18 = vmul.f32 0.7882353, %v610_v52 }
 0x21f   : > { %809 = vst.msk [vmem:[%s1495_s22 + $0x48] sm:$0xff] %vm799_vm2, %v792_v11  ;;  %v613_v43 = vpop.xlane.xlu1 %612 }
 0x220   : > { %v727_v3 = vsub.f32 0.0, %v711_v59  ;;  %v697_v60 = vmul.f32 0.7882353, %v613_v43  ;;  %v793_v5 = vsel %vm777_vm12, %v726_v24, 0.0  ;;  %v712_v36 = vadd.f32 %v696_v18, %v680_v20 }
 0x221   : > { %810 = vst.msk [vmem:[%s1495_s22 + $0x50] sm:$0xff] %vm799_vm2, %v793_v5  ;;  %v616_v61 = vpop.xlane.xlu0 %615 }
 0x222   : > { %v794_v12 = vsel %vm778_vm13, %v727_v3, 0.0  ;;  %v713_v15 = vadd.f32 %v697_v60, %v681_v38  ;;  %v728_v27 = vsub.f32 0.0, %v712_v36  ;;  %v698_v63 = vmul.f32 0.7882353, %v616_v61 }
 0x223   : > { %811 = vst.msk [vmem:[%s1495_s22 + $0x58] sm:$0xff] %vm799_vm2, %v794_v12  ;;  %v619_v14 = vpop.xlane.xlu1 %618 }
 0x224   : > { %v729_v30 = vsub.f32 0.0, %v713_v15  ;;  %v795_v22 = vsel %vm779_vm14, %v728_v27, 0.0  ;;  %v699_v9 = vmul.f32 0.7882353, %v619_v14 }
 0x225   : > { %812 = vst.msk [vmem:[%s1495_s22 + $0x60] sm:$0xff] %vm799_vm2, %v795_v22  ;;  %v664_v7 = vpop.xlane.xlu0 %663 }
 0x226   : > { %v796_v51 = vsel %vm780_vm15, %v729_v30, 0.0  ;;  %v682_v0 = vmul.f32 0.011764706, %v664_v7 }
 0x227   : > { %813 = vst.msk [vmem:[%s1495_s22 + $0x68] sm:$0xff] %vm799_vm2, %v796_v51  ;;  %v667_v45 = vpop.xlane.xlu1 %666 }
 0x228   : > { %v683_v19 = vmul.f32 0.011764706, %v667_v45  ;;  %v714_v31 = vadd.f32 %v698_v63, %v682_v0 }
 0x22a   : > { %v715_v50 = vadd.f32 %v699_v9, %v683_v19  ;;  %v730_v23 = vsub.f32 0.0, %v714_v31 }
 0x22c   : > { %v731_v46 = vsub.f32 0.0, %v715_v50  ;;  %v797_v57 = vsel %vm781_vm1, %v730_v23, 0.0 }
 0x22d   : > { %814 = vst.msk [vmem:[%s1495_s22 + $0x70] sm:$0xff] %vm799_vm2, %v797_v57 }
 0x22e   : > { %v798_v53 = vsel %vm782_vm0, %v731_v46, 0.0 }
 0x22f   : > { %815 = vst.msk [vmem:[%s1495_s22 + $0x78] sm:$0xff] %vm799_vm2, %v798_v53 }
 0x230 PF: > { %s12_s9 = sadd.s32 1, %s1011_s9  }
 0x231   : > { %p9_p4 = scmp.ge.s32.totalorder %s12_s9, 6  }
 0x233   :  { %11 = sbr.rel (!%p9_p4) target bundleno = 1 (0x1), region = 61 }

</bundles_post_ra>
